<compile_context>
chip_gen: v7x
topology: tpu7x:2x2x1
jax: 0.10.0
libtpu: 0.0.40
codegen_flags: <defaults>
</compile_context>

<pallas_src>
import jax
import jax.numpy as jnp
from jax.experimental import pallas as pl
from jax.experimental.pallas import tpu as pltpu


def _round_up(n, m):
    return ((n + m - 1) // m) * m


def _vae_kernel(scalars_ref,                       # SMEM (1, 2): [sigma_1, eta_dec]
                sig2_ref,                          # VMEM (1, d2p): |sigma2| (pre-abs)
                x_ref, w1t_ref, w2t_ref, u2t_ref, u1t_ref,
                eps_z1_ref, eps_z2_ref, eps_y_ref,
                # outputs
                y_ref, mu_z1_ref, z1p_ref, mu_z2_ref, mu_z1d_ref, mu_y_ref):
    sigma_1 = scalars_ref[0, 0]
    eta_dec = scalars_ref[0, 1]

    x = x_ref[...]                                                          # (TB, d0p)

    # encoder_z1: mu_z1_enc = (W_1 @ x.T).T == x @ W_1.T
    mu_z1 = jnp.dot(x, w1t_ref[...], preferred_element_type=jnp.float32)   # (TB, d1p)
    mu_z1_ref[...] = mu_z1

    # reparameterize z1 with diag(Sigma_1) = sigma_1 * ones(d1)
    z1p = mu_z1 + sigma_1 * eps_z1_ref[...]                                 # (TB, d1p)
    z1p_ref[...] = z1p

    # encoder_z2: mu_z2_enc = z1p @ W_2.T
    mu_z2 = jnp.dot(z1p, w2t_ref[...], preferred_element_type=jnp.float32)  # (TB, d2p)
    mu_z2_ref[...] = mu_z2

    # reparameterize z2 with diag(Sigma_2) = |sigma2_elements|  (abs precomputed)
    z2p = mu_z2 + sig2_ref[...] * eps_z2_ref[...]                           # (TB, d2p)

    # decoder_z1: mu_z1_dec = z2p @ U_2.T
    mu_z1d_ref[...] = jnp.dot(z2p, u2t_ref[...],
                              preferred_element_type=jnp.float32)           # (TB, d1p)

    # decoder_y: mu_y = z1p @ U_1.T   (uses z1_parameterized_enc, as in torch)
    mu_y = jnp.dot(z1p, u1t_ref[...], preferred_element_type=jnp.float32)   # (TB, d0p)
    mu_y_ref[...] = mu_y

    # y_parameterized = mu_y + eta_dec * eps_y
    y_ref[...] = mu_y + eta_dec * eps_y_ref[...]


@jax.jit
def linear_vae_forward(x, params, eps, eta_dec):
    """Full LinearVAE forward as a single batch-gridded Pallas kernel.

    x:      (B, d0) float32
    params: dict with W1 (d1,d0), W2 (d2,d1), U2 (d1,d2), U1 (d0,d1),
            sigma2_elements (d2,), sigma_1 (scalar)
    eps:    dict with eps_z1 (B,d1), eps_z2 (B,d2), eps_y (B,d0)
    Returns (y_parameterized, mu_z1_enc, z1_parameterized_enc, mu_z2_enc,
             mu_z1_dec, mu_y), matching the PyTorch forward.
    """
    f32 = jnp.float32
    B, d0 = x.shape
    d1 = params["W1"].shape[0]
    d2 = params["W2"].shape[0]

    # Lane-dense padded feature widths (multiples of 128).
    d0p = _round_up(d0, 128)
    d1p = _round_up(d1, 128)
    d2p = _round_up(d2, 128)

    # Batch tile: fill the MXU M dim (up to 256 rows) while keeping the
    # double-buffered per-tile working set under ~24 MiB (v7x-safe).
    bytes_per_row = 4 * (4 * d0p + 4 * d1p + 2 * d2p)   # x, eps*, 6 outputs per row
    tile_budget = 24 << 20
    TB = min(256, _round_up(B, 8))
    while TB > 8 and 2 * TB * bytes_per_row > tile_budget:
        TB = max(8, (TB // 2) // 8 * 8)
    Bp = _round_up(B, TB)
    n_tiles = Bp // TB

    def pad2(a, rows, cols):
        a = a.astype(f32)
        return jnp.pad(a, ((0, rows - a.shape[0]), (0, cols - a.shape[1])))

    # Pre-transpose + zero-pad weights (fused/const-folded under jit).
    xp  = pad2(x, Bp, d0p)
    w1t = pad2(params["W1"].T, d0p, d1p)
    w2t = pad2(params["W2"].T, d1p, d2p)
    u2t = pad2(params["U2"].T, d2p, d1p)
    u1t = pad2(params["U1"].T, d1p, d0p)
    sig2 = pad2(jnp.abs(params["sigma2_elements"]).reshape(1, d2), 1, d2p)
    ez1 = pad2(eps["eps_z1"], Bp, d1p)
    ez2 = pad2(eps["eps_z2"], Bp, d2p)
    ey  = pad2(eps["eps_y"],  Bp, d0p)

    scalars = jnp.stack([jnp.asarray(params["sigma_1"], f32),
                         jnp.asarray(eta_dec, f32)]).reshape(1, 2)

    def batch_spec(width):          # pipelined over the batch grid
        return pl.BlockSpec((TB, width), lambda i: (i, 0))

    def resident(rows, cols):       # constant block index -> stays VMEM-resident
        return pl.BlockSpec((rows, cols), lambda i: (0, 0))

    in_specs = [
        pl.BlockSpec(memory_space=pltpu.MemorySpace.SMEM),   # [sigma_1, eta_dec]
        resident(1, d2p),                                    # |sigma2|
        batch_spec(d0p),                                     # x
        resident(d0p, d1p), resident(d1p, d2p),              # W1^T, W2^T
        resident(d2p, d1p), resident(d1p, d0p),              # U2^T, U1^T
        batch_spec(d1p), batch_spec(d2p), batch_spec(d0p),   # eps_z1, eps_z2, eps_y
    ]
    out_specs = (
        batch_spec(d0p),  # y_parameterized
        batch_spec(d1p),  # mu_z1_enc
        batch_spec(d1p),  # z1_parameterized_enc
        batch_spec(d2p),  # mu_z2_enc
        batch_spec(d1p),  # mu_z1_dec
        batch_spec(d0p),  # mu_y
    )
    out_shapes = (
        jax.ShapeDtypeStruct((Bp, d0p), f32),
        jax.ShapeDtypeStruct((Bp, d1p), f32),
        jax.ShapeDtypeStruct((Bp, d1p), f32),
        jax.ShapeDtypeStruct((Bp, d2p), f32),
        jax.ShapeDtypeStruct((Bp, d1p), f32),
        jax.ShapeDtypeStruct((Bp, d0p), f32),
    )

    weight_bytes = 4 * (2 * d0p * d1p + 2 * d1p * d2p + d2p)
    vmem_limit = int(min(max(weight_bytes + 2 * TB * bytes_per_row + (8 << 20),
                             16 << 20),
                         48 << 20))

    outs = pl.pallas_call(
        _vae_kernel,
        grid=(n_tiles,),
        in_specs=in_specs,
        out_specs=out_specs,
        out_shape=out_shapes,
        compiler_params=pltpu.CompilerParams(
            dimension_semantics=("parallel",),
            vmem_limit_bytes=vmem_limit,
        ),
    )(scalars, sig2, xp, w1t, w2t, u2t, u1t, ez1, ez2, ey)

    y, mu_z1, z1p, mu_z2, mu_z1d, mu_y = outs
    return (y[:B, :d0], mu_z1[:B, :d1], z1p[:B, :d1],
            mu_z2[:B, :d2], mu_z1d[:B, :d1], mu_y[:B, :d0])


if __name__ == "__main__":
    # small, MLP-consistent shapes
    B, d0, d1, d2 = 8, 32, 16, 4
    eta_dec = 0.5
    sigma_1 = 0.3

    key = jax.random.PRNGKey(0)
    k = jax.random.split(key, 9)

    # deterministic parameter init mirroring __init__ (normal(0, 0.1), rand(d2))
    params = {
        "W1": 0.1 * jax.random.normal(k[0], (d1, d0), dtype=jnp.float32),
        "U1": 0.1 * jax.random.normal(k[1], (d0, d1), dtype=jnp.float32),
        "W2": 0.1 * jax.random.normal(k[2], (d2, d1), dtype=jnp.float32),
        "U2": 0.1 * jax.random.normal(k[3], (d1, d2), dtype=jnp.float32),
        "sigma2_elements": jax.random.uniform(k[4], (d2,), dtype=jnp.float32),
        "sigma_1": sigma_1,
    }

    x = jax.random.normal(k[5], (B, d0), dtype=jnp.float32)

    # reparameterization noise (torch.randn_like) — generated in glue, consumed in-kernel
    eps = {
        "eps_z1": jax.random.normal(k[6], (B, d1), dtype=jnp.float32),
        "eps_z2": jax.random.normal(k[7], (B, d2), dtype=jnp.float32),
        "eps_y": jax.random.normal(k[8], (B, d0), dtype=jnp.float32),
    }

    outs = linear_vae_forward(x, params, eps, eta_dec)
    outs = jax.block_until_ready(outs)

    # lightweight correctness check against plain-JAX reference
    hp = jax.lax.Precision.HIGHEST
    mu_z1_ref = jnp.dot(x, params["W1"].T, precision=hp)
    z1p_ref = mu_z1_ref + sigma_1 * eps["eps_z1"]
    mu_z2_ref = jnp.dot(z1p_ref, params["W2"].T, precision=hp)
    z2p_ref = mu_z2_ref + jnp.abs(params["sigma2_elements"]) * eps["eps_z2"]
    mu_z1d_ref = jnp.dot(z2p_ref, params["U2"].T, precision=hp)
    mu_y_ref = jnp.dot(z1p_ref, params["U1"].T, precision=hp)
    y_ref = mu_y_ref + eta_dec * eps["eps_y"]
    refs = (y_ref, mu_z1_ref, z1p_ref, mu_z2_ref, mu_z1d_ref, mu_y_ref)
    for o, r in zip(outs, refs):
        assert o.shape == r.shape, "shape mismatch"
        assert jnp.allclose(o, r, atol=1e-4, rtol=1e-4), "value mismatch"

    print("KERNEL_OK")
</pallas_src>

<mosaic_0001>
module attributes {stable_mosaic.version = 11 : i64} {
  func.func @_vae_kernel(%arg0: i32, %arg1: memref<1x2xf32, #tpu.memory_space<smem>>, %arg2: memref<1x128xf32, #tpu.memory_space<vmem>>, %arg3: memref<8x128xf32, #tpu.memory_space<vmem>>, %arg4: memref<128x128xf32, #tpu.memory_space<vmem>>, %arg5: memref<128x128xf32, #tpu.memory_space<vmem>>, %arg6: memref<128x128xf32, #tpu.memory_space<vmem>>, %arg7: memref<128x128xf32, #tpu.memory_space<vmem>>, %arg8: memref<8x128xf32, #tpu.memory_space<vmem>>, %arg9: memref<8x128xf32, #tpu.memory_space<vmem>>, %arg10: memref<8x128xf32, #tpu.memory_space<vmem>>, %arg11: memref<8x128xf32, #tpu.memory_space<vmem>>, %arg12: memref<8x128xf32, #tpu.memory_space<vmem>>, %arg13: memref<8x128xf32, #tpu.memory_space<vmem>>, %arg14: memref<8x128xf32, #tpu.memory_space<vmem>>, %arg15: memref<8x128xf32, #tpu.memory_space<vmem>>, %arg16: memref<8x128xf32, #tpu.memory_space<vmem>>) attributes {dimension_semantics = [#tpu.dimension_semantics<parallel>], iteration_bounds = array<i64: 1>, scalar_prefetch = 0 : i64, scratch_operands = 0 : i64, tpu.core_type = #tpu.core_type<tc>, window_params = [{transform_indices = @transform_0, window_bounds = array<i64: 1, 2>}, {pipeline_mode = #tpu.pipeline_mode<synchronous>, transform_indices = @transform_1, window_bounds = array<i64: 1, 128>}, {transform_indices = @transform_2, window_bounds = array<i64: 8, 128>}, {pipeline_mode = #tpu.pipeline_mode<synchronous>, transform_indices = @transform_3, window_bounds = array<i64: 128, 128>}, {pipeline_mode = #tpu.pipeline_mode<synchronous>, transform_indices = @transform_4, window_bounds = array<i64: 128, 128>}, {pipeline_mode = #tpu.pipeline_mode<synchronous>, transform_indices = @transform_5, window_bounds = array<i64: 128, 128>}, {pipeline_mode = #tpu.pipeline_mode<synchronous>, transform_indices = @transform_6, window_bounds = array<i64: 128, 128>}, {transform_indices = @transform_7, window_bounds = array<i64: 8, 128>}, {transform_indices = @transform_8, window_bounds = array<i64: 8, 128>}, {transform_indices = @transform_9, window_bounds = array<i64: 8, 128>}, {transform_indices = @transform_10, window_bounds = array<i64: 8, 128>}, {transform_indices = @transform_11, window_bounds = array<i64: 8, 128>}, {transform_indices = @transform_12, window_bounds = array<i64: 8, 128>}, {transform_indices = @transform_13, window_bounds = array<i64: 8, 128>}, {transform_indices = @transform_14, window_bounds = array<i64: 8, 128>}, {transform_indices = @transform_15, window_bounds = array<i64: 8, 128>}]} {
    %c0 = arith.constant 0 : index
    %c0_0 = arith.constant 0 : index
    %0 = memref.load %arg1[%c0, %c0_0] : memref<1x2xf32, #tpu.memory_space<smem>>
    %c0_1 = arith.constant 0 : index
    %c1 = arith.constant 1 : index
    %1 = memref.load %arg1[%c0_1, %c1] : memref<1x2xf32, #tpu.memory_space<smem>>
    %c0_2 = arith.constant 0 : index
    %c0_3 = arith.constant 0 : index
    %2 = vector.load %arg3[%c0_2, %c0_3] : memref<8x128xf32, #tpu.memory_space<vmem>>, vector<8x128xf32>
    %c0_4 = arith.constant 0 : index
    %c0_5 = arith.constant 0 : index
    %3 = vector.load %arg4[%c0_4, %c0_5] : memref<128x128xf32, #tpu.memory_space<vmem>>, vector<128x128xf32>
    %cst = arith.constant dense<0.000000e+00> : vector<8x128xf32>
    %4 = tpu.matmul %2, %3, %cst {dimension_numbers = #tpu.dot_dimension_numbers<[1], [0], [0], [1], [0, 0, 1, 1], [], []>} : vector<8x128xf32>, vector<128x128xf32>, vector<8x128xf32> -> vector<8x128xf32>
    %c0_6 = arith.constant 0 : index
    %c0_7 = arith.constant 0 : index
    %5 = vector.load %arg12[%c0_6, %c0_7] : memref<8x128xf32, #tpu.memory_space<vmem>>, vector<8x128xf32>
    tpu.vector_store %arg12[%c0_6, %c0_7], %4 {strides = array<i32>} : memref<8x128xf32, #tpu.memory_space<vmem>>, vector<8x128xf32>,
    %c0_8 = arith.constant 0 : index
    %c0_9 = arith.constant 0 : index
    %6 = vector.load %arg8[%c0_8, %c0_9] : memref<8x128xf32, #tpu.memory_space<vmem>>, vector<8x128xf32>
    %7 = vector.broadcast %0 : f32 to vector<8x128xf32>
    %8 = arith.mulf %7, %6 : vector<8x128xf32>
    %9 = arith.addf %4, %8 : vector<8x128xf32>
    %c0_10 = arith.constant 0 : index
    %c0_11 = arith.constant 0 : index
    %10 = vector.load %arg13[%c0_10, %c0_11] : memref<8x128xf32, #tpu.memory_space<vmem>>, vector<8x128xf32>
    tpu.vector_store %arg13[%c0_10, %c0_11], %9 {strides = array<i32>} : memref<8x128xf32, #tpu.memory_space<vmem>>, vector<8x128xf32>,
    %c0_12 = arith.constant 0 : index
    %c0_13 = arith.constant 0 : index
    %11 = vector.load %arg5[%c0_12, %c0_13] : memref<128x128xf32, #tpu.memory_space<vmem>>, vector<128x128xf32>
    %cst_14 = arith.constant dense<0.000000e+00> : vector<8x128xf32>
    %12 = tpu.matmul %9, %11, %cst_14 {dimension_numbers = #tpu.dot_dimension_numbers<[1], [0], [0], [1], [0, 0, 1, 1], [], []>} : vector<8x128xf32>, vector<128x128xf32>, vector<8x128xf32> -> vector<8x128xf32>
    %c0_15 = arith.constant 0 : index
    %c0_16 = arith.constant 0 : index
    %13 = vector.load %arg14[%c0_15, %c0_16] : memref<8x128xf32, #tpu.memory_space<vmem>>, vector<8x128xf32>
    tpu.vector_store %arg14[%c0_15, %c0_16], %12 {strides = array<i32>} : memref<8x128xf32, #tpu.memory_space<vmem>>, vector<8x128xf32>,
    %c0_17 = arith.constant 0 : index
    %c0_18 = arith.constant 0 : index
    %14 = vector.load %arg2[%c0_17, %c0_18] : memref<1x128xf32, #tpu.memory_space<vmem>>, vector<1x128xf32>
    %c0_19 = arith.constant 0 : index
    %c0_20 = arith.constant 0 : index
    %15 = vector.load %arg9[%c0_19, %c0_20] : memref<8x128xf32, #tpu.memory_space<vmem>>, vector<8x128xf32>
    %16 = vector.broadcast %14 : vector<1x128xf32> to vector<8x128xf32>
    %17 = arith.mulf %16, %15 : vector<8x128xf32>
    %18 = arith.addf %12, %17 : vector<8x128xf32>
    %c0_21 = arith.constant 0 : index
    %c0_22 = arith.constant 0 : index
    %19 = vector.load %arg6[%c0_21, %c0_22] : memref<128x128xf32, #tpu.memory_space<vmem>>, vector<128x128xf32>
    %cst_23 = arith.constant dense<0.000000e+00> : vector<8x128xf32>
    %20 = tpu.matmul %18, %19, %cst_23 {dimension_numbers = #tpu.dot_dimension_numbers<[1], [0], [0], [1], [0, 0, 1, 1], [], []>} : vector<8x128xf32>, vector<128x128xf32>, vector<8x128xf32> -> vector<8x128xf32>
    %c0_24 = arith.constant 0 : index
    %c0_25 = arith.constant 0 : index
    %21 = vector.load %arg15[%c0_24, %c0_25] : memref<8x128xf32, #tpu.memory_space<vmem>>, vector<8x128xf32>
    tpu.vector_store %arg15[%c0_24, %c0_25], %20 {strides = array<i32>} : memref<8x128xf32, #tpu.memory_space<vmem>>, vector<8x128xf32>,
    %c0_26 = arith.constant 0 : index
    %c0_27 = arith.constant 0 : index
    %22 = vector.load %arg7[%c0_26, %c0_27] : memref<128x128xf32, #tpu.memory_space<vmem>>, vector<128x128xf32>
    %cst_28 = arith.constant dense<0.000000e+00> : vector<8x128xf32>
    %23 = tpu.matmul %9, %22, %cst_28 {dimension_numbers = #tpu.dot_dimension_numbers<[1], [0], [0], [1], [0, 0, 1, 1], [], []>} : vector<8x128xf32>, vector<128x128xf32>, vector<8x128xf32> -> vector<8x128xf32>
    %c0_29 = arith.constant 0 : index
    %c0_30 = arith.constant 0 : index
    %24 = vector.load %arg16[%c0_29, %c0_30] : memref<8x128xf32, #tpu.memory_space<vmem>>, vector<8x128xf32>
    tpu.vector_store %arg16[%c0_29, %c0_30], %23 {strides = array<i32>} : memref<8x128xf32, #tpu.memory_space<vmem>>, vector<8x128xf32>,
    %c0_31 = arith.constant 0 : index
    %c0_32 = arith.constant 0 : index
    %25 = vector.load %arg10[%c0_31, %c0_32] : memref<8x128xf32, #tpu.memory_space<vmem>>, vector<8x128xf32>
    %26 = vector.broadcast %1 : f32 to vector<8x128xf32>
    %27 = arith.mulf %26, %25 : vector<8x128xf32>
    %28 = arith.addf %23, %27 : vector<8x128xf32>
    %c0_33 = arith.constant 0 : index
    %c0_34 = arith.constant 0 : index
    %29 = vector.load %arg11[%c0_33, %c0_34] : memref<8x128xf32, #tpu.memory_space<vmem>>, vector<8x128xf32>
    tpu.vector_store %arg11[%c0_33, %c0_34], %28 {strides = array<i32>} : memref<8x128xf32, #tpu.memory_space<vmem>>, vector<8x128xf32>,
    return
  }
  func.func @transform_0(%arg0: i32) -> (i32, i32) {
    %c0_i32 = arith.constant 0 : i32
    %c0_i32_0 = arith.constant 0 : i32
    %c0_i32_1 = arith.constant 0 : i32
    return %c0_i32, %c0_i32_0 : i32, i32
  }
  func.func @transform_1(%arg0: i32) -> (i32, i32) {
    %c0_i32 = arith.constant 0 : i32
    %c0_i32_0 = arith.constant 0 : i32
    %c0_i32_1 = arith.constant 0 : i32
    return %c0_i32, %c0_i32_0 : i32, i32
  }
  func.func @transform_2(%arg0: i32) -> (i32, i32) {
    %c0_i32 = arith.constant 0 : i32
    %c0_i32_0 = arith.constant 0 : i32
    return %arg0, %c0_i32 : i32, i32
  }
  func.func @transform_3(%arg0: i32) -> (i32, i32) {
    %c0_i32 = arith.constant 0 : i32
    %c0_i32_0 = arith.constant 0 : i32
    %c0_i32_1 = arith.constant 0 : i32
    return %c0_i32, %c0_i32_0 : i32, i32
  }
  func.func @transform_4(%arg0: i32) -> (i32, i32) {
    %c0_i32 = arith.constant 0 : i32
    %c0_i32_0 = arith.constant 0 : i32
    %c0_i32_1 = arith.constant 0 : i32
    return %c0_i32, %c0_i32_0 : i32, i32
  }
  func.func @transform_5(%arg0: i32) -> (i32, i32) {
    %c0_i32 = arith.constant 0 : i32
    %c0_i32_0 = arith.constant 0 : i32
    %c0_i32_1 = arith.constant 0 : i32
    return %c0_i32, %c0_i32_0 : i32, i32
  }
  func.func @transform_6(%arg0: i32) -> (i32, i32) {
    %c0_i32 = arith.constant 0 : i32
    %c0_i32_0 = arith.constant 0 : i32
    %c0_i32_1 = arith.constant 0 : i32
    return %c0_i32, %c0_i32_0 : i32, i32
  }
  func.func @transform_7(%arg0: i32) -> (i32, i32) {
    %c0_i32 = arith.constant 0 : i32
    %c0_i32_0 = arith.constant 0 : i32
    return %arg0, %c0_i32 : i32, i32
  }
  func.func @transform_8(%arg0: i32) -> (i32, i32) {
    %c0_i32 = arith.constant 0 : i32
    %c0_i32_0 = arith.constant 0 : i32
    return %arg0, %c0_i32 : i32, i32
  }
  func.func @transform_9(%arg0: i32) -> (i32, i32) {
    %c0_i32 = arith.constant 0 : i32
    %c0_i32_0 = arith.constant 0 : i32
    return %arg0, %c0_i32 : i32, i32
  }
  func.func @transform_10(%arg0: i32) -> (i32, i32) {
    %c0_i32 = arith.constant 0 : i32
    %c0_i32_0 = arith.constant 0 : i32
    return %arg0, %c0_i32 : i32, i32
  }
  func.func @transform_11(%arg0: i32) -> (i32, i32) {
    %c0_i32 = arith.constant 0 : i32
    %c0_i32_0 = arith.constant 0 : i32
    return %arg0, %c0_i32 : i32, i32
  }
  func.func @transform_12(%arg0: i32) -> (i32, i32) {
    %c0_i32 = arith.constant 0 : i32
    %c0_i32_0 = arith.constant 0 : i32
    return %arg0, %c0_i32 : i32, i32
  }
  func.func @transform_13(%arg0: i32) -> (i32, i32) {
    %c0_i32 = arith.constant 0 : i32
    %c0_i32_0 = arith.constant 0 : i32
    return %arg0, %c0_i32 : i32, i32
  }
  func.func @transform_14(%arg0: i32) -> (i32, i32) {
    %c0_i32 = arith.constant 0 : i32
    %c0_i32_0 = arith.constant 0 : i32
    return %arg0, %c0_i32 : i32, i32
  }
  func.func @transform_15(%arg0: i32) -> (i32, i32) {
    %c0_i32 = arith.constant 0 : i32
    %c0_i32_0 = arith.constant 0 : i32
    return %arg0, %c0_i32 : i32, i32
  }
}

</mosaic_0001>

<bundles_post_ra>
// kernel: linear_vae_forward.1
= control target key start
LH: loop header
LB: loop body
LE: loop exit
PB: predicated region body
PF: predicated region fallthrough
CT: control target
= control target key end

     0   :  { %21 = vsyncpa [#allocation4], 0  ;;  %s1348_s0 = inlined_call_operand.vmem [shape: f32[1,2], index: 0, kind: input, shape index: {}]   ;;  %s1349_s1 = inlined_call_operand.vmem [shape: f32[1,128], index: 1, kind: input, shape index: {}]   ;;  %s1350_s2 = inlined_call_operand.vmem [shape: f32[8,128], index: 2, kind: input, shape index: {}]   ;;  %s1351_s3 = inlined_call_operand.vmem [shape: f32[128,128], index: 3, kind: input, shape index: {}]   ;;  %s1352_s4 = inlined_call_operand.vmem [shape: f32[128,128], index: 4, kind: input, shape index: {}]   ;;  %s1353_s5 = inlined_call_operand.vmem [shape: f32[128,128], index: 5, kind: input, shape index: {}]   ;;  %s1354_s6 = inlined_call_operand.vmem [shape: f32[128,128], index: 6, kind: input, shape index: {}]   ;;  %s1355_s7 = inlined_call_operand.vmem [shape: f32[8,128], index: 7, kind: input, shape index: {}]   ;;  %s1356_s8 = inlined_call_operand.vmem [shape: f32[8,128], index: 8, kind: input, shape index: {}]   ;;  %s1357_s9 = inlined_call_operand.vmem [shape: f32[8,128], index: 9, kind: input, shape index: {}]   ;;  %s1358_s10 = inlined_call_operand.hbm [shape: f32[8,128], index: 10, kind: output, shape index: {0}]   ;;  %s1359_s11 = inlined_call_operand.hbm [shape: f32[8,128], index: 11, kind: output, shape index: {1}]   ;;  %s1360_s12 = inlined_call_operand.hbm [shape: f32[8,128], index: 12, kind: output, shape index: {2}]   ;;  %s1361_s13 = inlined_call_operand.vmem [shape: f32[8,128], index: 13, kind: output, shape index: {3}]   ;;  %s1362_s14 = inlined_call_operand.hbm [shape: f32[8,128], index: 14, kind: output, shape index: {4}]   ;;  %s1363_s15 = inlined_call_operand.hbm [shape: f32[8,128], index: 15, kind: output, shape index: {5}]  }
   0x1   :  { %22 = vsyncpa [#allocation3], 0 }
   0x2   :  { %23 = vsyncpa [#allocation7], 0 }
   0x3   :  { %24 = vsyncpa [#allocation10], 0  ;;  %s31_s20 = sshll.u32 %s1348_s0, 4  ;;  %s32_s20 = int_to_ptr.vmem [resolvable:$true] %s31_s20 }
   0x4   :  { %s816_s21 = scalar_lea.vmem %s32_s20, 16  ;;  %p821_p1 = scmp.lt.s32.totalorder %s32_s20, %s32_s20 }
   0x5   :  { %p817_p0 = scmp.ne.s32.totalorder %s32_s20, %s816_s21  ;;  %p822_p2 = scmp.lt.s32.totalorder %s816_s21, %s816_s21 }
   0x7   :  { %p823_p3 = por %p822_p2, %p821_p1 }
   0x9   :  { %p824_p4 = pnand %p823_p3, %p817_p0 }
   0xb   :  { %827 = shalt.err (!%p824_p4)
}
   0xc   :  { %s946_s22 = smov [#allocation2]  }
   0xd   :  { %34 = dma.vmem_to_smem %s32_s20, 16, %s946_s22, [#allocation4]  }
   0xe   :  { %938 = dma.done.wait [#allocation4], 16  }
   0xf   :  { %939 = vsyncadd [#allocation4], 4294967280 }
  0x10   :  { %56 = sfence }
  0x11   :  { %v60_v0 = vld [vmem:[%s1351_s3] sm:$0xff]  ;;  %v61_v1 = vld [vmem:[%s1351_s3 + $0x8] sm:$0xff]  ;;  %v62_v2 = vld [vmem:[%s1351_s3 + $0x10] sm:$0xff]  ;;  %v947_v3 = vmov 0.0|0.0   ;;  %vm948_vm0 = vmmov 0   ;;  %v949_v6 = vmov 0.0  }
  0x12   :  { %711 = vmatprep.subr.bf16.mxu0 %v947_v3  ;;  %v712_v4 = vpack.c.bf16 %v61_v1, %v60_v0  ;;  %v63_v5 = vld [vmem:[%s1351_s3 + $0x18] sm:$0xff]  ;;  %603 = vmatprep.mubr.msk.f32.mxu0 %vm948_vm0, %v949_v6  ;;  %v64_v8 = vld [vmem:[%s1351_s3 + $0x20] sm:$0xff]  ;;  %v65_v9 = vld [vmem:[%s1351_s3 + $0x28] sm:$0xff]  ;;  %s57_s30 = sld [smem:[#allocation2]] }
  0x13   :  { %735 = vmatprep.subr.bf16.mxu1 %v947_v3  ;;  %638 = vmatprep.mubr.msk.f32.mxu1 %vm948_vm0, %v949_v6  ;;  %v715_v7 = vpack.c.bf16 %v63_v5, %v62_v2  ;;  %v152_v10 = vld [vmem:[%s1352_s4] sm:$0xff]  ;;  %v153_v11 = vld [vmem:[%s1352_s4 + $0x8] sm:$0xff]  ;;  %v154_v12 = vld [vmem:[%s1352_s4 + $0x10] sm:$0xff]  ;;  %v718_v14 = vpack.c.bf16 %v65_v9, %v64_v8 }
  0x14   :  { %713 = vmatpush3.bf16.msra.mxu0 %v712_v4  ;;  %v155_v13 = vld [vmem:[%s1352_s4 + $0x18] sm:$0xff]  ;;  %v736_v15 = vpack.c.bf16 %v153_v11, %v152_v10  ;;  %v66_v16 = vld [vmem:[%s1351_s3 + $0x30] sm:$0xff]  ;;  %v156_v19 = vld [vmem:[%s1352_s4 + $0x20] sm:$0xff] }
  0x15   :  { %714 = vmatprep.subr.bf16.mxu0 %v947_v3  ;;  %v67_v17 = vld [vmem:[%s1351_s3 + $0x38] sm:$0xff]  ;;  %v739_v18 = vpack.c.bf16 %v155_v13, %v154_v12  ;;  %v157_v20 = vld [vmem:[%s1352_s4 + $0x28] sm:$0xff]  ;;  %v68_v22 = vld [vmem:[%s1351_s3 + $0x40] sm:$0xff] }
  0x16   :  { %737 = vmatpush3.bf16.msra.mxu1 %v736_v15  ;;  %v721_v21 = vpack.c.bf16 %v67_v17, %v66_v16  ;;  %v69_v23 = vld [vmem:[%s1351_s3 + $0x48] sm:$0xff]  ;;  %v742_v24 = vpack.c.bf16 %v157_v20, %v156_v19  ;;  %v158_v25 = vld [vmem:[%s1352_s4 + $0x30] sm:$0xff]  ;;  %v159_v26 = vld [vmem:[%s1352_s4 + $0x38] sm:$0xff] }
  0x17   :  { %738 = vmatprep.subr.bf16.mxu1 %v947_v3  ;;  %v724_v27 = vpack.c.bf16 %v69_v23, %v68_v22  ;;  %v70_v28 = vld [vmem:[%s1351_s3 + $0x50] sm:$0xff]  ;;  %v71_v29 = vld [vmem:[%s1351_s3 + $0x58] sm:$0xff]  ;;  %v745_v30 = vpack.c.bf16 %v159_v26, %v158_v25  ;;  %v160_v31 = vld [vmem:[%s1352_s4 + $0x40] sm:$0xff] }
  0x18   :  { %716 = vmatpush3.bf16.msra.mxu0 %v715_v7  ;;  %v161_v32 = vld [vmem:[%s1352_s4 + $0x48] sm:$0xff]  ;;  %v727_v33 = vpack.c.bf16 %v71_v29, %v70_v28  ;;  %v72_v34 = vld [vmem:[%s1351_s3 + $0x60] sm:$0xff]  ;;  %v162_v37 = vld [vmem:[%s1352_s4 + $0x50] sm:$0xff]  ;;  %v148_v11 = vstv %s57_s30 }
  0x19   :  { %717 = vmatprep.subr.bf16.mxu0 %v947_v3  ;;  %v73_v35 = vld [vmem:[%s1351_s3 + $0x68] sm:$0xff]  ;;  %v748_v36 = vpack.c.bf16 %v161_v32, %v160_v31  ;;  %v163_v38 = vld [vmem:[%s1352_s4 + $0x58] sm:$0xff]  ;;  %v74_v40 = vld [vmem:[%s1351_s3 + $0x70] sm:$0xff] }
  0x1a   :  { %740 = vmatpush3.bf16.msra.mxu1 %v739_v18  ;;  %v730_v39 = vpack.c.bf16 %v73_v35, %v72_v34  ;;  %v75_v41 = vld [vmem:[%s1351_s3 + $0x78] sm:$0xff]  ;;  %v751_v42 = vpack.c.bf16 %v163_v38, %v162_v37  ;;  %v164_v43 = vld [vmem:[%s1352_s4 + $0x60] sm:$0xff]  ;;  %v165_v44 = vld [vmem:[%s1352_s4 + $0x68] sm:$0xff] }
  0x1b   :  { %741 = vmatprep.subr.bf16.mxu1 %v947_v3  ;;  %v733_v45 = vpack.c.bf16 %v75_v41, %v74_v40  ;;  %v754_v46 = vpack.c.bf16 %v165_v44, %v164_v43  ;;  %v166_v47 = vld [vmem:[%s1352_s4 + $0x70] sm:$0xff]  ;;  %v167_v48 = vld [vmem:[%s1352_s4 + $0x78] sm:$0xff]  ;;  %v59_v49 = vld [vmem:[%s1350_s2] sm:$0xff] }
  0x1c   :  { %719 = vmatpush3.bf16.msra.mxu0 %v718_v14  ;;  %v757_v50 = vpack.c.bf16 %v167_v48, %v166_v47  ;;  %v249_v51 = vld [vmem:[%s1353_s5] sm:$0xff]  ;;  %v250_v52 = vld [vmem:[%s1353_s5 + $0x8] sm:$0xff]  ;;  %v251_v53 = vld [vmem:[%s1353_s5 + $0x10] sm:$0xff] }
  0x1d   :  { %720 = vmatprep.subr.bf16.mxu0 %v947_v3  ;;  %v760_v54 = vpack.c.bf16 %v250_v52, %v249_v51  ;;  %v252_v55 = vld [vmem:[%s1353_s5 + $0x18] sm:$0xff]  ;;  %v253_v57 = vld [vmem:[%s1353_s5 + $0x20] sm:$0xff]  ;;  %v254_v58 = vld [vmem:[%s1353_s5 + $0x28] sm:$0xff] }
  0x1e   :  { %743 = vmatpush3.bf16.msra.mxu1 %v742_v24  ;;  %v763_v56 = vpack.c.bf16 %v252_v55, %v251_v53  ;;  %v766_v59 = vpack.c.bf16 %v254_v58, %v253_v57  ;;  %v255_v60 = vld [vmem:[%s1353_s5 + $0x30] sm:$0xff]  ;;  %v256_v61 = vld [vmem:[%s1353_s5 + $0x38] sm:$0xff]  ;;  %v257_v63 = vld [vmem:[%s1353_s5 + $0x40] sm:$0xff] }
  0x1f   :  { %744 = vmatprep.subr.bf16.mxu1 %v947_v3  ;;  %v769_v62 = vpack.c.bf16 %v256_v61, %v255_v60  ;;  %v258_v0 = vld [vmem:[%s1353_s5 + $0x48] sm:$0xff]  ;;  %v259_v2 = vld [vmem:[%s1353_s5 + $0x50] sm:$0xff]  ;;  %v260_v4 = vld [vmem:[%s1353_s5 + $0x58] sm:$0xff] }
  0x20   :  { %722 = vmatpush3.bf16.msra.mxu0 %v721_v21  ;;  %v772_v1 = vpack.c.bf16 %v258_v0, %v257_v63  ;;  %v775_v5 = vpack.c.bf16 %v260_v4, %v259_v2  ;;  %v261_v7 = vld [vmem:[%s1353_s5 + $0x60] sm:$0xff]  ;;  %v262_v8 = vld [vmem:[%s1353_s5 + $0x68] sm:$0xff]  ;;  %v338_v19 = vld [vmem:[%s1354_s6 + $0x10] sm:$0xff] }
  0x21   :  { %723 = vmatprep.subr.bf16.mxu0 %v947_v3  ;;  %v778_v9 = vpack.c.bf16 %v262_v8, %v261_v7  ;;  %v147_v10 = vld [vmem:[%s1355_s7] sm:$0xff]  ;;  %v337_v14 = vld [vmem:[%s1354_s6 + $0x8] sm:$0xff]  ;;  %v339_v20 = vld [vmem:[%s1354_s6 + $0x18] sm:$0xff] }
  0x22   :  { %746 = vmatpush3.bf16.msra.mxu1 %v745_v30  ;;  %v149_v12 = vmul.f32 %v148_v11, %v147_v10  ;;  %v336_v13 = vld [vmem:[%s1354_s6] sm:$0xff]  ;;  %v787_v21 = vpack.c.bf16 %v339_v20, %v338_v19  ;;  %v341_v23 = vld [vmem:[%s1354_s6 + $0x28] sm:$0xff]  ;;  %v342_v25 = vld [vmem:[%s1354_s6 + $0x30] sm:$0xff] }
  0x23   :  { %747 = vmatprep.subr.bf16.mxu1 %v947_v3  ;;  %v784_v16 = vpack.c.bf16 %v337_v14, %v336_v13  ;;  %v340_v22 = vld [vmem:[%s1354_s6 + $0x20] sm:$0xff]  ;;  %v345_v28 = vld [vmem:[%s1354_s6 + $0x48] sm:$0xff]  ;;  %v346_v30 = vld [vmem:[%s1354_s6 + $0x50] sm:$0xff] }
  0x24   :  { %725 = vmatpush3.bf16.msra.mxu0 %v724_v27  ;;  %v790_v24 = vpack.c.bf16 %v341_v23, %v340_v22  ;;  %v344_v27 = vld [vmem:[%s1354_s6 + $0x40] sm:$0xff]  ;;  %v347_v31 = vld [vmem:[%s1354_s6 + $0x58] sm:$0xff]  ;;  %v349_v34 = vld [vmem:[%s1354_s6 + $0x68] sm:$0xff] }
  0x25   :  { %726 = vmatprep.subr.bf16.mxu0 %v947_v3  ;;  %v796_v29 = vpack.c.bf16 %v345_v28, %v344_v27  ;;  %v799_v32 = vpack.c.bf16 %v347_v31, %v346_v30  ;;  %v351_v37 = vld [vmem:[%s1354_s6 + $0x78] sm:$0xff]  ;;  %v423_v47 = vld [vmem:[%s1357_s9] sm:$0xff] }
  0x26   :  { %749 = vmatpush3.bf16.msra.mxu1 %v748_v36  ;;  %v350_v36 = vld [vmem:[%s1354_s6 + $0x70] sm:$0xff]  ;;  %v264_v40 = vld [vmem:[%s1353_s5 + $0x78] sm:$0xff] }
  0x27   :  { %750 = vmatprep.subr.bf16.mxu1 %v947_v3  ;;  %v805_v38 = vpack.c.bf16 %v351_v37, %v350_v36 }
  0x28   :  { %728 = vmatpush3.bf16.msra.mxu0 %v727_v33  ;;  %v348_v33 = vld [vmem:[%s1354_s6 + $0x60] sm:$0xff] }
  0x29   :  { %729 = vmatprep.subr.bf16.mxu0 %v947_v3  ;;  %v802_v35 = vpack.c.bf16 %v349_v34, %v348_v33 }
  0x2a   :  { %752 = vmatpush3.bf16.msra.mxu1 %v751_v42  ;;  %v502_v42 = vld [vmem:[%s1349_s1] ss:$0 sm:$0xff]  ;;  %s950_s1 = smov [#allocation6]  }
  0x2b   :  { %753 = vmatprep.subr.bf16.mxu1 %v947_v3 }
  0x2c   :  { %731 = vmatpush3.bf16.msra.mxu0 %v730_v39  ;;  %v263_v39 = vld [vmem:[%s1353_s5 + $0x70] sm:$0xff]  ;;  %s501_s5 = sld [smem:[#allocation2 + $0x1]] }
  0x2d   :  { %732 = vmatprep.subr.bf16.mxu0 %v947_v3  ;;  %v781_v41 = vpack.c.bf16 %v264_v40, %v263_v39 }
  0x2e   :  { %755 = vmatpush3.bf16.msra.mxu1 %v754_v46 }
  0x2f   :  { %756 = vmatprep.subr.bf16.mxu1 %v947_v3 }
  0x30   :  { %734 = vmatpush3.bf16.msra.mxu0 %v733_v45 }
  0x31   :  { %759 = vmatprep.subr.bf16.mxu0 %v947_v3 }
  0x32   :  { %758 = vmatpush3.bf16.msra.mxu1 %v757_v50  ;;  %v424_v48 = vstv %s501_s5 }
  0x33   :  { %604 = vmatmul.mubr.f32.vlgmr.msra.gmra.mrb[0].mxu0 %v59_v49  ;;  %783 = vmatprep.subr.bf16.mxu1 %v947_v3  ;;  %v425_v49 = vmul.f32 %v424_v48, %v423_v47 }
  0x34   :  { %673 = vmatprep.mubr.msk.f32.mxu0 %vm948_vm0, %v949_v6  ;;  %761 = vmatpush3.bf16.msra.mxu0 %v760_v54 }
  0x35   :  { %762 = vmatprep.subr.bf16.mxu0 %v947_v3 }
  0x38   :  { %764 = vmatpush3.bf16.msra.mxu0 %v763_v56 }
  0x39   :  { %765 = vmatprep.subr.bf16.mxu0 %v947_v3 }
  0x3c   :  { %767 = vmatpush3.bf16.msra.mxu0 %v766_v59 }
  0x3d   :  { %768 = vmatprep.subr.bf16.mxu0 %v947_v3 }
  0x40   :  { %770 = vmatpush3.bf16.msra.mxu0 %v769_v62 }
  0x41   :  { %771 = vmatprep.subr.bf16.mxu0 %v947_v3 }
  0x44   :  { %773 = vmatpush3.bf16.msra.mxu0 %v772_v1 }
  0x45   :  { %774 = vmatprep.subr.bf16.mxu0 %v947_v3 }
  0x48   :  { %776 = vmatpush3.bf16.msra.mxu0 %v775_v5 }
  0x49   :  { %777 = vmatprep.subr.bf16.mxu0 %v947_v3 }
  0x4c   :  { %779 = vmatpush3.bf16.msra.mxu0 %v778_v9 }
  0x4d   :  { %780 = vmatprep.subr.bf16.mxu0 %v947_v3 }
  0x50   :  { %782 = vmatpush3.bf16.msra.mxu0 %v781_v41 }
 0x106   :  { %v142_v15 = vpop.f32.mrb[0].mxu0 }
 0x107   :  { %v150_v17 = vadd.f32 %v149_v12, %v142_v15  ;;  %146 = vst [vmem:[#allocation6] sm:$0xff] %v142_v15  ;;  %v605_v18 = vpop.f32.mrb[1].mxu0 }
 0x109   :  { %151 = vst [vmem:[#allocation8] sm:$0xff] %v150_v17  ;;  %639 = vmatmul.mubr.f32.vlgmr.msra.gmra.mrb[0].mxu1 %v150_v17 }
 0x10a   :  { %785 = vmatpush3.bf16.msra.mxu1 %v784_v16  ;;  %708 = vmatprep.mubr.msk.f32.mxu1 %vm948_vm0, %v949_v6  ;;  %v343_v6 = vld [vmem:[%s1354_s6 + $0x38] sm:$0xff] }
 0x10b   :  { %786 = vmatprep.subr.bf16.mxu1 %v947_v3  ;;  %v793_v26 = vpack.c.bf16 %v343_v6, %v342_v25 }
 0x10e   :  { %788 = vmatpush3.bf16.msra.mxu1 %v787_v21 }
 0x10f   :  { %789 = vmatprep.subr.bf16.mxu1 %v947_v3 }
 0x112   :  { %791 = vmatpush3.bf16.msra.mxu1 %v790_v24 }
 0x113   :  { %792 = vmatprep.subr.bf16.mxu1 %v947_v3 }
 0x116   :  { %794 = vmatpush3.bf16.msra.mxu1 %v793_v26 }
 0x117   :  { %795 = vmatprep.subr.bf16.mxu1 %v947_v3 }
 0x11a   :  { %797 = vmatpush3.bf16.msra.mxu1 %v796_v29 }
 0x11b   :  { %798 = vmatprep.subr.bf16.mxu1 %v947_v3 }
 0x11e   :  { %800 = vmatpush3.bf16.msra.mxu1 %v799_v32 }
 0x11f   :  { %801 = vmatprep.subr.bf16.mxu1 %v947_v3 }
 0x122   :  { %803 = vmatpush3.bf16.msra.mxu1 %v802_v35 }
 0x123   :  { %804 = vmatprep.subr.bf16.mxu1 %v947_v3  ;;  %v240_v3 = vld [vmem:[%s1356_s8] sm:$0xff]  ;;  %s444_s8 = sshll.u32 %s950_s1, 4  ;;  %s445_s8 = int_to_ptr.vmem [resolvable:$true] %s444_s8 }
 0x124   :  { %v247_v43 = vmul.f32 %v502_v42, %v240_v3  ;;  %s828_s20 = scalar_lea.vmem %s445_s8, 128  ;;  %p833_p6 = scmp.lt.s32.totalorder %s445_s8, %s445_s8 }
 0x125   :  { %p829_p5 = scmp.ne.s32.totalorder %s445_s8, %s828_s20  ;;  %p834_p7 = scmp.lt.s32.totalorder %s828_s20, %s828_s20 }
 0x126   :  { %806 = vmatpush3.bf16.msra.mxu1 %v805_v38 }
 0x127   :  { %p835_p8 = por %p834_p7, %p833_p6 }
 0x129   :  { %709 = vmatmul.mubr.f32.vlgmr.msra.gmra.mrb[2].mxu1 %v150_v17  ;;  %p836_p9 = pnand %p835_p8, %p829_p5 }
 0x1dc   :  { %v234_v44 = vpop.f32.mrb[0].mxu1 }
 0x1dd   :  { %238 = vst [vmem:[%s1361_s13] sm:$0xff] %v234_v44  ;;  %v248_v45 = vadd.f32 %v247_v43, %v234_v44  ;;  %v640_v46 = vpop.f32.mrb[1].mxu1 }
 0x1df   :  { %674 = vmatmul.mubr.f32.vlgmr.msra.gmra.mrb[2].mxu0 %v248_v45 }
 0x1fc   :  { %v418_v50 = vpop.f32.mrb[2].mxu1 }
 0x1fd   :  { %422 = vst [vmem:[#allocation11] sm:$0xff] %v418_v50  ;;  %v710_v51 = vpop.f32.mrb[3].mxu1  ;;  %v426_v52 = vadd.f32 %v425_v49, %v418_v50 }
 0x1ff   :  { %427 = vst [vmem:[#allocation5] sm:$0xff] %v426_v52 }
 0x200   :  { %839 = shalt.err (!%p836_p9)
}
 0x201   :  { %s840_s9 = scalar_lea.hbm %s1359_s11, 128 }
 0x202   :  { %p841_p10 = scmp.ne.s32.totalorder %s1359_s11, %s840_s9  ;;  %p844_p11 = scmp.lt.u32.totalorder %s840_s9, %s1359_s11 }
 0x204   :  { %p846_p12 = pnand %p844_p11, %p841_p10 }
 0x206   :  { %849 = shalt.err (!%p846_p12)
}
 0x207   :  { %447 = dma.vmem_to_hbm [thread:$0]  %s445_s8, 128, %s1359_s11, [#allocation7]  }
 0x208   :  { %s951_s26 = smov [#allocation5]   ;;  %s952_s0 = smov [#allocation8]  }
 0x209   :  { %s434_s2 = sshll.u32 %s951_s26, 4  ;;  %s454_s27 = sshll.u32 %s952_s0, 4  ;;  %s435_s2 = int_to_ptr.vmem [resolvable:$true] %s434_s2  ;;  %s455_s27 = int_to_ptr.vmem [resolvable:$true] %s454_s27 }
 0x20a   :  { %s850_s28 = scalar_lea.vmem %s435_s2, 128  ;;  %p855_p0 = scmp.lt.s32.totalorder %s435_s2, %s435_s2 }
 0x20b   :  { %p851_p13 = scmp.ne.s32.totalorder %s435_s2, %s850_s28  ;;  %p856_p1 = scmp.lt.s32.totalorder %s850_s28, %s850_s28 }
 0x20d   :  { %p857_p2 = por %p856_p1, %p855_p0 }
 0x20f   :  { %p858_p3 = pnand %p857_p2, %p851_p13 }
 0x211   :  { %861 = shalt.err (!%p858_p3)
}
 0x212   :  { %s862_s6 = scalar_lea.hbm %s1358_s10, 128 }
 0x213   :  { %p863_p4 = scmp.ne.s32.totalorder %s1358_s10, %s862_s6  ;;  %p866_p5 = scmp.lt.u32.totalorder %s862_s6, %s1358_s10 }
 0x215   :  { %p868_p6 = pnand %p866_p5, %p863_p4 }
 0x217   :  { %871 = shalt.err (!%p868_p6)
}
 0x218   :  { %437 = dma.vmem_to_hbm [thread:$0]  %s435_s2, 128, %s1358_s10, [#allocation3]  }
 0x219   :  { %s872_s19 = scalar_lea.vmem %s455_s27, 128  ;;  %p877_p8 = scmp.lt.s32.totalorder %s455_s27, %s455_s27 }
 0x21a   :  { %p873_p7 = scmp.ne.s32.totalorder %s455_s27, %s872_s19  ;;  %p878_p9 = scmp.lt.s32.totalorder %s872_s19, %s872_s19 }
 0x21c   :  { %p879_p10 = por %p878_p9, %p877_p8 }
 0x21e   :  { %p880_p11 = pnand %p879_p10, %p873_p7 }
 0x220   :  { %883 = shalt.err (!%p880_p11)
}
 0x221   :  { %s884_s20 = scalar_lea.hbm %s1360_s12, 128 }
 0x222   :  { %p885_p12 = scmp.ne.s32.totalorder %s1360_s12, %s884_s20  ;;  %p888_p13 = scmp.lt.u32.totalorder %s884_s20, %s1360_s12 }
 0x224   :  { %p890_p0 = pnand %p888_p13, %p885_p12 }
 0x226   :  { %893 = shalt.err (!%p890_p0)
}
 0x227   :  { %457 = dma.vmem_to_hbm [thread:$0]  %s455_s27, 128, %s1360_s12, [#allocation7]  }
 0x228   :  { %s953_s23 = smov [#allocation9]   ;;  %s954_s4 = smov [#allocation11]  }
 0x229   :  { %s466_s24 = sshll.u32 %s953_s23, 4  ;;  %s476_s25 = sshll.u32 %s954_s4, 4  ;;  %s467_s24 = int_to_ptr.vmem [resolvable:$true] %s466_s24  ;;  %s477_s25 = int_to_ptr.vmem [resolvable:$true] %s476_s25 }
 0x22a   :  { %s894_s26 = scalar_lea.vmem %s467_s24, 128  ;;  %p899_p2 = scmp.lt.s32.totalorder %s467_s24, %s467_s24 }
 0x22b   :  { %p895_p1 = scmp.ne.s32.totalorder %s467_s24, %s894_s26  ;;  %p900_p3 = scmp.lt.s32.totalorder %s894_s26, %s894_s26 }
 0x22d   :  { %p901_p4 = por %p900_p3, %p899_p2 }
 0x22f   :  { %p902_p5 = pnand %p901_p4, %p895_p1 }
 0x2b2   :  { %v331_v53 = vpop.f32.mrb[2].mxu0 }
 0x2b3   :  { %335 = vst [vmem:[#allocation9] sm:$0xff] %v331_v53  ;;  %v675_v54 = vpop.f32.mrb[3].mxu0 }
 0x2b4   :  { %905 = shalt.err (!%p902_p5)
}
 0x2b5   :  { %s906_s12 = scalar_lea.hbm %s1362_s14, 128 }
 0x2b6   :  { %p907_p6 = scmp.ne.s32.totalorder %s1362_s14, %s906_s12  ;;  %p910_p7 = scmp.lt.u32.totalorder %s906_s12, %s1362_s14 }
 0x2b8   :  { %p912_p8 = pnand %p910_p7, %p907_p6 }
 0x2ba   :  { %915 = shalt.err (!%p912_p8)
}
 0x2bb   :  { %469 = dma.vmem_to_hbm [thread:$0]  %s467_s24, 128, %s1362_s14, [#allocation10]  }
 0x2bc   :  { %s916_s17 = scalar_lea.vmem %s477_s25, 128  ;;  %p921_p10 = scmp.lt.s32.totalorder %s477_s25, %s477_s25 }
 0x2bd   :  { %p917_p9 = scmp.ne.s32.totalorder %s477_s25, %s916_s17  ;;  %p922_p11 = scmp.lt.s32.totalorder %s916_s17, %s916_s17 }
 0x2bf   :  { %p923_p12 = por %p922_p11, %p921_p10 }
 0x2c1   :  { %p924_p13 = pnand %p923_p12, %p917_p9 }
 0x2c3   :  { %927 = shalt.err (!%p924_p13)
}
 0x2c4   :  { %s928_s5 = scalar_lea.hbm %s1363_s15, 128 }
 0x2c5   :  { %p929_p0 = scmp.ne.s32.totalorder %s1363_s15, %s928_s5  ;;  %p932_p1 = scmp.lt.u32.totalorder %s928_s5, %s1363_s15 }
 0x2c7   :  { %p934_p2 = pnand %p932_p1, %p929_p0 }
 0x2c9   :  { %937 = shalt.err (!%p934_p2)
}
 0x2ca   :  { %479 = dma.vmem_to_hbm [thread:$0]  %s477_s25, 128, %s1363_s15, [#allocation10]  }
 0x2cb   :  { %940 = dma.done.wait [#allocation3], 128  }
 0x2cc   :  { %941 = vsyncadd [#allocation3], 4294967168 }
 0x2cd   :  { %942 = dma.done.wait [#allocation7], 256  }
 0x2ce   :  { %943 = vsyncadd [#allocation7], 4294967040 }
 0x2cf   :  { %944 = dma.done.wait [#allocation10], 256  }
 0x2d0   :  { %945 = vsyncadd [#allocation10], 4294967040 }
 0x2d1   :  { %497 = vsyncpa [#allocation3], 1 }
 0x2d2   :  { %498 = vsyncpa [#allocation7], 1 }
 0x2d3   :  { %499 = vsyncpa [#allocation10], 1 }
 0x2d4   :  { %500 = vsyncpa [#allocation4], 1 }

</bundles_post_ra>
